<compile_context>
chip_gen: v6e
topology: v6e:2x2x1
jax: 0.10.0
libtpu: 0.0.40
codegen_flags: <defaults>
</compile_context>

<pallas_src>
import numpy as np
import jax
import jax.numpy as jnp
from jax.experimental import pallas as pl
from jax.experimental.pallas import tpu as pltpu


# ----------------------------------------------------------------------------
# Pallas kernel
# ----------------------------------------------------------------------------
def c2f_fused_kernel(x_ref, w1_ref, b1_ref, w2_ref, b2_ref, wh_ref, bh_ref,
                     fine_ref, head_ref):
    """Fused coarse-to-fine cursor decoder (single invocation, no grid).

    x_ref   : (B, C)     bf16 token features
    w1_ref  : (C, K*C)   bf16 per-coarse-cell first-layer weights, lane-stacked
    b1_ref  : (1, K*C)   f32  first-layer biases
    w2_ref  : (C, F)     bf16 shared fine projection (NOT block-diagonal)
    b2_ref  : (1, F)     f32  fine bias
    wh_ref  : (C, H)     bf16 NO_OP + per-screen deselect head
    bh_ref  : (1, H)     f32  head bias
    fine_ref: (B, K*F)   f32  lane-dense fine logits   (out)
    head_ref: (B, H)     f32  head logits              (out)
    """
    B, C = x_ref.shape
    K = w1_ref.shape[1] // C
    F = w2_ref.shape[1]

    x = x_ref[...]

    # NO_OP / per-screen deselect head (MXU lane padding here is free).
    head_ref[...] = (jnp.dot(x, wh_ref[...], preferred_element_type=jnp.float32)
                     + bh_ref[...])

    # First layer: one lane-dense matmul covering all K coarse cells at once.
    h = jnp.dot(x, w1_ref[...], preferred_element_type=jnp.float32) + b1_ref[...]
    # TODO(synk): PyTorch nn.GELU() defaults to exact erf; the tanh approximation
    # is used here (EUP-friendly) and matches the pure-JAX reference below.
    h = jax.nn.gelu(h, approximate=True)                      # (B, K*C) f32
    hb = h.astype(w2_ref.dtype)                               # bf16 for the MXU

    # Shared fine projection applied per coarse cell via static lane slices.
    # Statically unrolled; the tiny (C, F) RHS is shared across all K matmuls.
    w2 = w2_ref[...]
    b2 = b2_ref[...]
    for k in range(K):
        hk = hb[:, k * C:(k + 1) * C]                         # (B, C) lane slice
        fine_ref[:, k * F:(k + 1) * F] = (
            jnp.dot(hk, w2, preferred_element_type=jnp.float32) + b2)


# ----------------------------------------------------------------------------
# One-time parameter / index preparation (hoisted out of the forward)
# ----------------------------------------------------------------------------
def prepare_params(params, weight_dtype=jnp.bfloat16):
    """Build the kernel-ready weight layouts ONCE (not per forward call)."""
    w1, b1, w2, b2, wh, bh = params
    K, C, _ = w1.shape
    F = w2.shape[1]
    H = wh.shape[1]
    # W1_flat[c, k*C + c'] = w1[k, c, c']   (lane-stacked over coarse cells)
    w1_flat = jnp.transpose(w1, (1, 0, 2)).reshape(C, K * C).astype(weight_dtype)
    b1_flat = b1.reshape(1, K * C).astype(jnp.float32)
    w2_c = w2.astype(weight_dtype)
    b2_f = b2.reshape(1, F).astype(jnp.float32)
    wh_c = wh.astype(weight_dtype)
    bh_f = bh.reshape(1, H).astype(jnp.float32)
    return (w1_flat, b1_flat, w2_c, b2_f, wh_c, bh_f)


def build_permutation(screens, fine_shape):
    """Static gather indices reproducing the PyTorch view/permute/ravel order.

    The gather source is concat([head (H cols), fine (K*F cols)], axis=1) with
    head = [NO_OP, deselect_0, deselect_1, ...] and fine column k*F + f.
    Output order: [NO_OP | per screen: deselect, screen raveled row-major].
    """
    th, tw = fine_shape
    H = 1 + len(screens)
    perm = [0]                                   # NO_OP
    k_off = 0
    for i, (_name, (sh, sw)) in enumerate(screens):
        ch, cw = sh // th, sw // tw
        perm.append(1 + i)                       # per-screen deselect
        for ci in range(ch):
            for ti in range(th):
                for cj in range(cw):
                    for tj in range(tw):
                        k = k_off + ci * cw + cj
                        f = ti * tw + tj
                        perm.append(H + k * (th * tw) + f)
        k_off += ch * cw
    return jnp.asarray(np.asarray(perm, dtype=np.int32))


# ----------------------------------------------------------------------------
# Forward
# ----------------------------------------------------------------------------
@jax.jit
def coarse_to_fine_visual_cursor_decoder(x, prepped, perm):
    w1_flat, b1_flat, w2_c, b2_f, wh_c, bh_f = prepped
    B, C = x.shape
    K = w1_flat.shape[1] // C
    F = w2_c.shape[1]
    H = wh_c.shape[1]

    x_c = x.astype(w1_flat.dtype)

    vmem = pl.BlockSpec(memory_space=pltpu.MemorySpace.VMEM)
    fine, head = pl.pallas_call(
        c2f_fused_kernel,
        out_shape=(jax.ShapeDtypeStruct((B, K * F), jnp.float32),
                   jax.ShapeDtypeStruct((B, H), jnp.float32)),
        in_specs=[vmem] * 7,
        out_specs=(vmem, vmem),
    )(x_c, w1_flat, b1_flat, w2_c, b2_f, wh_c, bh_f)

    combined = jnp.concatenate([head, fine], axis=1)          # (B, H + K*F)
    return jnp.take(combined, perm, axis=1)                   # (B, total)


# ----------------------------------------------------------------------------
# Pure-JAX reference (f32 weights, independent slice/transpose assembly)
# ----------------------------------------------------------------------------
def _assemble(fine, head, screens, fine_shape):
    B = fine.shape[0]
    th, tw = fine_shape
    parts = [head[:, 0:1]]                  # NO_OP logit
    start = 0
    for i, (_name, (sh, sw)) in enumerate(screens):
        ch, cw = sh // th, sw // tw
        stop = start + ch * cw
        xs = fine[:, start:stop, :].reshape(B, ch, cw, th, tw)
        xs = jnp.transpose(xs, (0, 1, 3, 2, 4)).reshape(B, sh * sw)
        parts.append(head[:, i + 1:i + 2])  # per-screen deselect logit
        parts.append(xs)                    # raveled screen logits
        start = stop
    return jnp.concatenate(parts, axis=1)


def reference(x, params, screens, fine_shape):
    w1, b1, w2, b2, wh, bh = params
    h = jax.nn.gelu(jnp.einsum('bc,kcd->bkd', x, w1) + b1[:, 0, :],
                    approximate=True)
    fine = jnp.einsum('bkd,df->bkf', h, w2) + b2
    head = x @ wh + bh
    return _assemble(fine, head, screens, fine_shape)


# ----------------------------------------------------------------------------
if __name__ == "__main__":
    # Synthetic "space": two screens + NO_OP; fine tiles of 4x4.
    B, C = 2, 32
    fine_shape = (4, 4)
    screens = (("table", (16, 16)), ("hand", (8, 8)))
    th, tw = fine_shape
    K = sum((sh // th) * (sw // tw) for _, (sh, sw) in screens)   # 16 + 4 = 20
    F = th * tw                                                   # 16
    H = 1 + len(screens)                                          # NO_OP + deselects

    key = jax.random.PRNGKey(0)
    ks = jax.random.split(key, 7)
    x = jax.random.normal(ks[0], (B, C), jnp.float32)
    w1 = 0.02 * jax.random.normal(ks[1], (K, C, C), jnp.float32)
    b1 = 0.02 * jax.random.normal(ks[2], (K, 1, C), jnp.float32)
    w2 = 0.02 * jax.random.normal(ks[3], (C, F), jnp.float32)
    b2 = 0.02 * jax.random.normal(ks[4], (1, F), jnp.float32)
    wh = 0.02 * jax.random.normal(ks[5], (C, H), jnp.float32)
    bh = 0.02 * jax.random.normal(ks[6], (1, H), jnp.float32)
    params = (w1, b1, w2, b2, wh, bh)

    # One-time prep (hoisted out of the forward).
    prepped = jax.tree_util.tree_map(jax.block_until_ready, prepare_params(params))
    perm = build_permutation(screens, fine_shape)

    out = coarse_to_fine_visual_cursor_decoder(x, prepped, perm)
    out = jax.block_until_ready(out)

    total = 1 + sum(1 + sh * sw for _, (sh, sw) in screens)       # 323
    assert out.shape == (B, total), out.shape

    ref = reference(x, params, screens, fine_shape)
    # bf16 weights in the kernel vs f32 reference -> loosened tolerance.
    assert jnp.allclose(out, ref, atol=1e-2, rtol=1e-2), float(
        jnp.max(jnp.abs(out - ref)))

    print("KERNEL_OK")
</pallas_src>

<mosaic_0001>
module attributes {stable_mosaic.version = 11 : i64} {
  func.func @c2f_fused_kernel(%arg0: memref<2x32xbf16, #tpu.memory_space<vmem>>, %arg1: memref<32x640xbf16, #tpu.memory_space<vmem>>, %arg2: memref<1x640xf32, #tpu.memory_space<vmem>>, %arg3: memref<32x16xbf16, #tpu.memory_space<vmem>>, %arg4: memref<1x16xf32, #tpu.memory_space<vmem>>, %arg5: memref<32x3xbf16, #tpu.memory_space<vmem>>, %arg6: memref<1x3xf32, #tpu.memory_space<vmem>>, %arg7: memref<2x320xf32, #tpu.memory_space<vmem>>, %arg8: memref<2x3xf32, #tpu.memory_space<vmem>>) attributes {dimension_semantics = [], scalar_prefetch = 0 : i64, scratch_operands = 0 : i64, tpu.core_type = #tpu.core_type<tc>} {
    %c0 = arith.constant 0 : index
    %c0_0 = arith.constant 0 : index
    %0 = vector.load %arg0[%c0, %c0_0] : memref<2x32xbf16, #tpu.memory_space<vmem>>, vector<2x32xbf16>
    %c0_1 = arith.constant 0 : index
    %c0_2 = arith.constant 0 : index
    %1 = vector.load %arg5[%c0_1, %c0_2] : memref<32x3xbf16, #tpu.memory_space<vmem>>, vector<32x3xbf16>
    %cst = arith.constant dense<0.000000e+00> : vector<2x3xf32>
    %2 = tpu.matmul %0, %1, %cst {dimension_numbers = #tpu.dot_dimension_numbers<[1], [0], [0], [1], [0, 0, 1, 1], [], []>} : vector<2x32xbf16>, vector<32x3xbf16>, vector<2x3xf32> -> vector<2x3xf32>
    %c0_3 = arith.constant 0 : index
    %c0_4 = arith.constant 0 : index
    %3 = vector.load %arg6[%c0_3, %c0_4] : memref<1x3xf32, #tpu.memory_space<vmem>>, vector<1x3xf32>
    %4 = vector.broadcast %3 : vector<1x3xf32> to vector<2x3xf32>
    %5 = arith.addf %2, %4 : vector<2x3xf32>
    %c0_5 = arith.constant 0 : index
    %c0_6 = arith.constant 0 : index
    %6 = vector.load %arg8[%c0_5, %c0_6] : memref<2x3xf32, #tpu.memory_space<vmem>>, vector<2x3xf32>
    tpu.vector_store %arg8[%c0_5, %c0_6], %5 {strides = array<i32>} : memref<2x3xf32, #tpu.memory_space<vmem>>, vector<2x3xf32>,
    %c0_7 = arith.constant 0 : index
    %c0_8 = arith.constant 0 : index
    %7 = vector.load %arg1[%c0_7, %c0_8] : memref<32x640xbf16, #tpu.memory_space<vmem>>, vector<32x640xbf16>
    %cst_9 = arith.constant dense<0.000000e+00> : vector<2x640xf32>
    %8 = tpu.matmul %0, %7, %cst_9 {dimension_numbers = #tpu.dot_dimension_numbers<[1], [0], [0], [1], [0, 0, 1, 1], [], []>} : vector<2x32xbf16>, vector<32x640xbf16>, vector<2x640xf32> -> vector<2x640xf32>
    %c0_10 = arith.constant 0 : index
    %c0_11 = arith.constant 0 : index
    %9 = vector.load %arg2[%c0_10, %c0_11] : memref<1x640xf32, #tpu.memory_space<vmem>>, vector<1x640xf32>
    %10 = vector.broadcast %9 : vector<1x640xf32> to vector<2x640xf32>
    %11 = arith.addf %8, %10 : vector<2x640xf32>
    %12 = arith.mulf %11, %11 : vector<2x640xf32>
    %13 = arith.mulf %11, %12 : vector<2x640xf32>
    %cst_12 = arith.constant 4.471500e-02 : f32
    %14 = vector.broadcast %cst_12 : f32 to vector<2x640xf32>
    %15 = arith.mulf %14, %13 : vector<2x640xf32>
    %16 = arith.addf %11, %15 : vector<2x640xf32>
    %cst_13 = arith.constant 0.797884583 : f32
    %17 = vector.broadcast %cst_13 : f32 to vector<2x640xf32>
    %18 = arith.mulf %17, %16 : vector<2x640xf32>
    %19 = math.tanh %18 : vector<2x640xf32>
    %cst_14 = arith.constant 1.000000e+00 : f32
    %20 = vector.broadcast %cst_14 : f32 to vector<2x640xf32>
    %21 = arith.addf %20, %19 : vector<2x640xf32>
    %cst_15 = arith.constant 5.000000e-01 : f32
    %22 = vector.broadcast %cst_15 : f32 to vector<2x640xf32>
    %23 = arith.mulf %22, %21 : vector<2x640xf32>
    %24 = arith.mulf %11, %23 : vector<2x640xf32>
    %25 = arith.truncf %24 : vector<2x640xf32> to vector<2x640xbf16>
    %c0_16 = arith.constant 0 : index
    %c0_17 = arith.constant 0 : index
    %26 = vector.load %arg3[%c0_16, %c0_17] : memref<32x16xbf16, #tpu.memory_space<vmem>>, vector<32x16xbf16>
    %c0_18 = arith.constant 0 : index
    %c0_19 = arith.constant 0 : index
    %27 = vector.load %arg4[%c0_18, %c0_19] : memref<1x16xf32, #tpu.memory_space<vmem>>, vector<1x16xf32>
    %28 = vector.extract_strided_slice %25 {offsets = [0, 0], sizes = [2, 32], strides = [1, 1]} : vector<2x640xbf16> to vector<2x32xbf16>
    %cst_20 = arith.constant dense<0.000000e+00> : vector<2x16xf32>
    %29 = tpu.matmul %28, %26, %cst_20 {dimension_numbers = #tpu.dot_dimension_numbers<[1], [0], [0], [1], [0, 0, 1, 1], [], []>} : vector<2x32xbf16>, vector<32x16xbf16>, vector<2x16xf32> -> vector<2x16xf32>
    %30 = vector.broadcast %27 : vector<1x16xf32> to vector<2x16xf32>
    %31 = arith.addf %29, %30 : vector<2x16xf32>
    %c0_21 = arith.constant 0 : index
    %c0_22 = arith.constant 0 : index
    %32 = vector.load %arg7[%c0_21, %c0_22] : memref<2x320xf32, #tpu.memory_space<vmem>>, vector<2x16xf32>
    tpu.vector_store %arg7[%c0_21, %c0_22], %31 {strides = array<i32>} : memref<2x320xf32, #tpu.memory_space<vmem>>, vector<2x16xf32>,
    %33 = vector.extract_strided_slice %25 {offsets = [0, 32], sizes = [2, 32], strides = [1, 1]} : vector<2x640xbf16> to vector<2x32xbf16>
    %cst_23 = arith.constant dense<0.000000e+00> : vector<2x16xf32>
    %34 = tpu.matmul %33, %26, %cst_23 {dimension_numbers = #tpu.dot_dimension_numbers<[1], [0], [0], [1], [0, 0, 1, 1], [], []>} : vector<2x32xbf16>, vector<32x16xbf16>, vector<2x16xf32> -> vector<2x16xf32>
    %35 = vector.broadcast %27 : vector<1x16xf32> to vector<2x16xf32>
    %36 = arith.addf %34, %35 : vector<2x16xf32>
    %c0_24 = arith.constant 0 : index
    %c16 = arith.constant 16 : index
    %37 = vector.load %arg7[%c0_24, %c16] : memref<2x320xf32, #tpu.memory_space<vmem>>, vector<2x16xf32>
    tpu.vector_store %arg7[%c0_24, %c16], %36 {strides = array<i32>} : memref<2x320xf32, #tpu.memory_space<vmem>>, vector<2x16xf32>,
    %38 = vector.extract_strided_slice %25 {offsets = [0, 64], sizes = [2, 32], strides = [1, 1]} : vector<2x640xbf16> to vector<2x32xbf16>
    %cst_25 = arith.constant dense<0.000000e+00> : vector<2x16xf32>
    %39 = tpu.matmul %38, %26, %cst_25 {dimension_numbers = #tpu.dot_dimension_numbers<[1], [0], [0], [1], [0, 0, 1, 1], [], []>} : vector<2x32xbf16>, vector<32x16xbf16>, vector<2x16xf32> -> vector<2x16xf32>
    %40 = vector.broadcast %27 : vector<1x16xf32> to vector<2x16xf32>
    %41 = arith.addf %39, %40 : vector<2x16xf32>
    %c0_26 = arith.constant 0 : index
    %c32 = arith.constant 32 : index
    %42 = vector.load %arg7[%c0_26, %c32] : memref<2x320xf32, #tpu.memory_space<vmem>>, vector<2x16xf32>
    tpu.vector_store %arg7[%c0_26, %c32], %41 {strides = array<i32>} : memref<2x320xf32, #tpu.memory_space<vmem>>, vector<2x16xf32>,
    %43 = vector.extract_strided_slice %25 {offsets = [0, 96], sizes = [2, 32], strides = [1, 1]} : vector<2x640xbf16> to vector<2x32xbf16>
    %cst_27 = arith.constant dense<0.000000e+00> : vector<2x16xf32>
    %44 = tpu.matmul %43, %26, %cst_27 {dimension_numbers = #tpu.dot_dimension_numbers<[1], [0], [0], [1], [0, 0, 1, 1], [], []>} : vector<2x32xbf16>, vector<32x16xbf16>, vector<2x16xf32> -> vector<2x16xf32>
    %45 = vector.broadcast %27 : vector<1x16xf32> to vector<2x16xf32>
    %46 = arith.addf %44, %45 : vector<2x16xf32>
    %c0_28 = arith.constant 0 : index
    %c48 = arith.constant 48 : index
    %47 = vector.load %arg7[%c0_28, %c48] : memref<2x320xf32, #tpu.memory_space<vmem>>, vector<2x16xf32>
    tpu.vector_store %arg7[%c0_28, %c48], %46 {strides = array<i32>} : memref<2x320xf32, #tpu.memory_space<vmem>>, vector<2x16xf32>,
    %48 = vector.extract_strided_slice %25 {offsets = [0, 128], sizes = [2, 32], strides = [1, 1]} : vector<2x640xbf16> to vector<2x32xbf16>
    %cst_29 = arith.constant dense<0.000000e+00> : vector<2x16xf32>
    %49 = tpu.matmul %48, %26, %cst_29 {dimension_numbers = #tpu.dot_dimension_numbers<[1], [0], [0], [1], [0, 0, 1, 1], [], []>} : vector<2x32xbf16>, vector<32x16xbf16>, vector<2x16xf32> -> vector<2x16xf32>
    %50 = vector.broadcast %27 : vector<1x16xf32> to vector<2x16xf32>
    %51 = arith.addf %49, %50 : vector<2x16xf32>
    %c0_30 = arith.constant 0 : index
    %c64 = arith.constant 64 : index
    %52 = vector.load %arg7[%c0_30, %c64] : memref<2x320xf32, #tpu.memory_space<vmem>>, vector<2x16xf32>
    tpu.vector_store %arg7[%c0_30, %c64], %51 {strides = array<i32>} : memref<2x320xf32, #tpu.memory_space<vmem>>, vector<2x16xf32>,
    %53 = vector.extract_strided_slice %25 {offsets = [0, 160], sizes = [2, 32], strides = [1, 1]} : vector<2x640xbf16> to vector<2x32xbf16>
    %cst_31 = arith.constant dense<0.000000e+00> : vector<2x16xf32>
    %54 = tpu.matmul %53, %26, %cst_31 {dimension_numbers = #tpu.dot_dimension_numbers<[1], [0], [0], [1], [0, 0, 1, 1], [], []>} : vector<2x32xbf16>, vector<32x16xbf16>, vector<2x16xf32> -> vector<2x16xf32>
    %55 = vector.broadcast %27 : vector<1x16xf32> to vector<2x16xf32>
    %56 = arith.addf %54, %55 : vector<2x16xf32>
    %c0_32 = arith.constant 0 : index
    %c80 = arith.constant 80 : index
    %57 = vector.load %arg7[%c0_32, %c80] : memref<2x320xf32, #tpu.memory_space<vmem>>, vector<2x16xf32>
    tpu.vector_store %arg7[%c0_32, %c80], %56 {strides = array<i32>} : memref<2x320xf32, #tpu.memory_space<vmem>>, vector<2x16xf32>,
    %58 = vector.extract_strided_slice %25 {offsets = [0, 192], sizes = [2, 32], strides = [1, 1]} : vector<2x640xbf16> to vector<2x32xbf16>
    %cst_33 = arith.constant dense<0.000000e+00> : vector<2x16xf32>
    %59 = tpu.matmul %58, %26, %cst_33 {dimension_numbers = #tpu.dot_dimension_numbers<[1], [0], [0], [1], [0, 0, 1, 1], [], []>} : vector<2x32xbf16>, vector<32x16xbf16>, vector<2x16xf32> -> vector<2x16xf32>
    %60 = vector.broadcast %27 : vector<1x16xf32> to vector<2x16xf32>
    %61 = arith.addf %59, %60 : vector<2x16xf32>
    %c0_34 = arith.constant 0 : index
    %c96 = arith.constant 96 : index
    %62 = vector.load %arg7[%c0_34, %c96] : memref<2x320xf32, #tpu.memory_space<vmem>>, vector<2x16xf32>
    tpu.vector_store %arg7[%c0_34, %c96], %61 {strides = array<i32>} : memref<2x320xf32, #tpu.memory_space<vmem>>, vector<2x16xf32>,
    %63 = vector.extract_strided_slice %25 {offsets = [0, 224], sizes = [2, 32], strides = [1, 1]} : vector<2x640xbf16> to vector<2x32xbf16>
    %cst_35 = arith.constant dense<0.000000e+00> : vector<2x16xf32>
    %64 = tpu.matmul %63, %26, %cst_35 {dimension_numbers = #tpu.dot_dimension_numbers<[1], [0], [0], [1], [0, 0, 1, 1], [], []>} : vector<2x32xbf16>, vector<32x16xbf16>, vector<2x16xf32> -> vector<2x16xf32>
    %65 = vector.broadcast %27 : vector<1x16xf32> to vector<2x16xf32>
    %66 = arith.addf %64, %65 : vector<2x16xf32>
    %c0_36 = arith.constant 0 : index
    %c112 = arith.constant 112 : index
    %67 = vector.load %arg7[%c0_36, %c112] : memref<2x320xf32, #tpu.memory_space<vmem>>, vector<2x16xf32>
    tpu.vector_store %arg7[%c0_36, %c112], %66 {strides = array<i32>} : memref<2x320xf32, #tpu.memory_space<vmem>>, vector<2x16xf32>,
    %68 = vector.extract_strided_slice %25 {offsets = [0, 256], sizes = [2, 32], strides = [1, 1]} : vector<2x640xbf16> to vector<2x32xbf16>
    %cst_37 = arith.constant dense<0.000000e+00> : vector<2x16xf32>
    %69 = tpu.matmul %68, %26, %cst_37 {dimension_numbers = #tpu.dot_dimension_numbers<[1], [0], [0], [1], [0, 0, 1, 1], [], []>} : vector<2x32xbf16>, vector<32x16xbf16>, vector<2x16xf32> -> vector<2x16xf32>
    %70 = vector.broadcast %27 : vector<1x16xf32> to vector<2x16xf32>
    %71 = arith.addf %69, %70 : vector<2x16xf32>
    %c0_38 = arith.constant 0 : index
    %c128 = arith.constant 128 : index
    %72 = vector.load %arg7[%c0_38, %c128] : memref<2x320xf32, #tpu.memory_space<vmem>>, vector<2x16xf32>
    tpu.vector_store %arg7[%c0_38, %c128], %71 {strides = array<i32>} : memref<2x320xf32, #tpu.memory_space<vmem>>, vector<2x16xf32>,
    %73 = vector.extract_strided_slice %25 {offsets = [0, 288], sizes = [2, 32], strides = [1, 1]} : vector<2x640xbf16> to vector<2x32xbf16>
    %cst_39 = arith.constant dense<0.000000e+00> : vector<2x16xf32>
    %74 = tpu.matmul %73, %26, %cst_39 {dimension_numbers = #tpu.dot_dimension_numbers<[1], [0], [0], [1], [0, 0, 1, 1], [], []>} : vector<2x32xbf16>, vector<32x16xbf16>, vector<2x16xf32> -> vector<2x16xf32>
    %75 = vector.broadcast %27 : vector<1x16xf32> to vector<2x16xf32>
    %76 = arith.addf %74, %75 : vector<2x16xf32>
    %c0_40 = arith.constant 0 : index
    %c144 = arith.constant 144 : index
    %77 = vector.load %arg7[%c0_40, %c144] : memref<2x320xf32, #tpu.memory_space<vmem>>, vector<2x16xf32>
    tpu.vector_store %arg7[%c0_40, %c144], %76 {strides = array<i32>} : memref<2x320xf32, #tpu.memory_space<vmem>>, vector<2x16xf32>,
    %78 = vector.extract_strided_slice %25 {offsets = [0, 320], sizes = [2, 32], strides = [1, 1]} : vector<2x640xbf16> to vector<2x32xbf16>
    %cst_41 = arith.constant dense<0.000000e+00> : vector<2x16xf32>
    %79 = tpu.matmul %78, %26, %cst_41 {dimension_numbers = #tpu.dot_dimension_numbers<[1], [0], [0], [1], [0, 0, 1, 1], [], []>} : vector<2x32xbf16>, vector<32x16xbf16>, vector<2x16xf32> -> vector<2x16xf32>
    %80 = vector.broadcast %27 : vector<1x16xf32> to vector<2x16xf32>
    %81 = arith.addf %79, %80 : vector<2x16xf32>
    %c0_42 = arith.constant 0 : index
    %c160 = arith.constant 160 : index
    %82 = vector.load %arg7[%c0_42, %c160] : memref<2x320xf32, #tpu.memory_space<vmem>>, vector<2x16xf32>
    tpu.vector_store %arg7[%c0_42, %c160], %81 {strides = array<i32>} : memref<2x320xf32, #tpu.memory_space<vmem>>, vector<2x16xf32>,
    %83 = vector.extract_strided_slice %25 {offsets = [0, 352], sizes = [2, 32], strides = [1, 1]} : vector<2x640xbf16> to vector<2x32xbf16>
    %cst_43 = arith.constant dense<0.000000e+00> : vector<2x16xf32>
    %84 = tpu.matmul %83, %26, %cst_43 {dimension_numbers = #tpu.dot_dimension_numbers<[1], [0], [0], [1], [0, 0, 1, 1], [], []>} : vector<2x32xbf16>, vector<32x16xbf16>, vector<2x16xf32> -> vector<2x16xf32>
    %85 = vector.broadcast %27 : vector<1x16xf32> to vector<2x16xf32>
    %86 = arith.addf %84, %85 : vector<2x16xf32>
    %c0_44 = arith.constant 0 : index
    %c176 = arith.constant 176 : index
    %87 = vector.load %arg7[%c0_44, %c176] : memref<2x320xf32, #tpu.memory_space<vmem>>, vector<2x16xf32>
    tpu.vector_store %arg7[%c0_44, %c176], %86 {strides = array<i32>} : memref<2x320xf32, #tpu.memory_space<vmem>>, vector<2x16xf32>,
    %88 = vector.extract_strided_slice %25 {offsets = [0, 384], sizes = [2, 32], strides = [1, 1]} : vector<2x640xbf16> to vector<2x32xbf16>
    %cst_45 = arith.constant dense<0.000000e+00> : vector<2x16xf32>
    %89 = tpu.matmul %88, %26, %cst_45 {dimension_numbers = #tpu.dot_dimension_numbers<[1], [0], [0], [1], [0, 0, 1, 1], [], []>} : vector<2x32xbf16>, vector<32x16xbf16>, vector<2x16xf32> -> vector<2x16xf32>
    %90 = vector.broadcast %27 : vector<1x16xf32> to vector<2x16xf32>
    %91 = arith.addf %89, %90 : vector<2x16xf32>
    %c0_46 = arith.constant 0 : index
    %c192 = arith.constant 192 : index
    %92 = vector.load %arg7[%c0_46, %c192] : memref<2x320xf32, #tpu.memory_space<vmem>>, vector<2x16xf32>
    tpu.vector_store %arg7[%c0_46, %c192], %91 {strides = array<i32>} : memref<2x320xf32, #tpu.memory_space<vmem>>, vector<2x16xf32>,
    %93 = vector.extract_strided_slice %25 {offsets = [0, 416], sizes = [2, 32], strides = [1, 1]} : vector<2x640xbf16> to vector<2x32xbf16>
    %cst_47 = arith.constant dense<0.000000e+00> : vector<2x16xf32>
    %94 = tpu.matmul %93, %26, %cst_47 {dimension_numbers = #tpu.dot_dimension_numbers<[1], [0], [0], [1], [0, 0, 1, 1], [], []>} : vector<2x32xbf16>, vector<32x16xbf16>, vector<2x16xf32> -> vector<2x16xf32>
    %95 = vector.broadcast %27 : vector<1x16xf32> to vector<2x16xf32>
    %96 = arith.addf %94, %95 : vector<2x16xf32>
    %c0_48 = arith.constant 0 : index
    %c208 = arith.constant 208 : index
    %97 = vector.load %arg7[%c0_48, %c208] : memref<2x320xf32, #tpu.memory_space<vmem>>, vector<2x16xf32>
    tpu.vector_store %arg7[%c0_48, %c208], %96 {strides = array<i32>} : memref<2x320xf32, #tpu.memory_space<vmem>>, vector<2x16xf32>,
    %98 = vector.extract_strided_slice %25 {offsets = [0, 448], sizes = [2, 32], strides = [1, 1]} : vector<2x640xbf16> to vector<2x32xbf16>
    %cst_49 = arith.constant dense<0.000000e+00> : vector<2x16xf32>
    %99 = tpu.matmul %98, %26, %cst_49 {dimension_numbers = #tpu.dot_dimension_numbers<[1], [0], [0], [1], [0, 0, 1, 1], [], []>} : vector<2x32xbf16>, vector<32x16xbf16>, vector<2x16xf32> -> vector<2x16xf32>
    %100 = vector.broadcast %27 : vector<1x16xf32> to vector<2x16xf32>
    %101 = arith.addf %99, %100 : vector<2x16xf32>
    %c0_50 = arith.constant 0 : index
    %c224 = arith.constant 224 : index
    %102 = vector.load %arg7[%c0_50, %c224] : memref<2x320xf32, #tpu.memory_space<vmem>>, vector<2x16xf32>
    tpu.vector_store %arg7[%c0_50, %c224], %101 {strides = array<i32>} : memref<2x320xf32, #tpu.memory_space<vmem>>, vector<2x16xf32>,
    %103 = vector.extract_strided_slice %25 {offsets = [0, 480], sizes = [2, 32], strides = [1, 1]} : vector<2x640xbf16> to vector<2x32xbf16>
    %cst_51 = arith.constant dense<0.000000e+00> : vector<2x16xf32>
    %104 = tpu.matmul %103, %26, %cst_51 {dimension_numbers = #tpu.dot_dimension_numbers<[1], [0], [0], [1], [0, 0, 1, 1], [], []>} : vector<2x32xbf16>, vector<32x16xbf16>, vector<2x16xf32> -> vector<2x16xf32>
    %105 = vector.broadcast %27 : vector<1x16xf32> to vector<2x16xf32>
    %106 = arith.addf %104, %105 : vector<2x16xf32>
    %c0_52 = arith.constant 0 : index
    %c240 = arith.constant 240 : index
    %107 = vector.load %arg7[%c0_52, %c240] : memref<2x320xf32, #tpu.memory_space<vmem>>, vector<2x16xf32>
    tpu.vector_store %arg7[%c0_52, %c240], %106 {strides = array<i32>} : memref<2x320xf32, #tpu.memory_space<vmem>>, vector<2x16xf32>,
    %108 = vector.extract_strided_slice %25 {offsets = [0, 512], sizes = [2, 32], strides = [1, 1]} : vector<2x640xbf16> to vector<2x32xbf16>
    %cst_53 = arith.constant dense<0.000000e+00> : vector<2x16xf32>
    %109 = tpu.matmul %108, %26, %cst_53 {dimension_numbers = #tpu.dot_dimension_numbers<[1], [0], [0], [1], [0, 0, 1, 1], [], []>} : vector<2x32xbf16>, vector<32x16xbf16>, vector<2x16xf32> -> vector<2x16xf32>
    %110 = vector.broadcast %27 : vector<1x16xf32> to vector<2x16xf32>
    %111 = arith.addf %109, %110 : vector<2x16xf32>
    %c0_54 = arith.constant 0 : index
    %c256 = arith.constant 256 : index
    %112 = vector.load %arg7[%c0_54, %c256] : memref<2x320xf32, #tpu.memory_space<vmem>>, vector<2x16xf32>
    tpu.vector_store %arg7[%c0_54, %c256], %111 {strides = array<i32>} : memref<2x320xf32, #tpu.memory_space<vmem>>, vector<2x16xf32>,
    %113 = vector.extract_strided_slice %25 {offsets = [0, 544], sizes = [2, 32], strides = [1, 1]} : vector<2x640xbf16> to vector<2x32xbf16>
    %cst_55 = arith.constant dense<0.000000e+00> : vector<2x16xf32>
    %114 = tpu.matmul %113, %26, %cst_55 {dimension_numbers = #tpu.dot_dimension_numbers<[1], [0], [0], [1], [0, 0, 1, 1], [], []>} : vector<2x32xbf16>, vector<32x16xbf16>, vector<2x16xf32> -> vector<2x16xf32>
    %115 = vector.broadcast %27 : vector<1x16xf32> to vector<2x16xf32>
    %116 = arith.addf %114, %115 : vector<2x16xf32>
    %c0_56 = arith.constant 0 : index
    %c272 = arith.constant 272 : index
    %117 = vector.load %arg7[%c0_56, %c272] : memref<2x320xf32, #tpu.memory_space<vmem>>, vector<2x16xf32>
    tpu.vector_store %arg7[%c0_56, %c272], %116 {strides = array<i32>} : memref<2x320xf32, #tpu.memory_space<vmem>>, vector<2x16xf32>,
    %118 = vector.extract_strided_slice %25 {offsets = [0, 576], sizes = [2, 32], strides = [1, 1]} : vector<2x640xbf16> to vector<2x32xbf16>
    %cst_57 = arith.constant dense<0.000000e+00> : vector<2x16xf32>
    %119 = tpu.matmul %118, %26, %cst_57 {dimension_numbers = #tpu.dot_dimension_numbers<[1], [0], [0], [1], [0, 0, 1, 1], [], []>} : vector<2x32xbf16>, vector<32x16xbf16>, vector<2x16xf32> -> vector<2x16xf32>
    %120 = vector.broadcast %27 : vector<1x16xf32> to vector<2x16xf32>
    %121 = arith.addf %119, %120 : vector<2x16xf32>
    %c0_58 = arith.constant 0 : index
    %c288 = arith.constant 288 : index
    %122 = vector.load %arg7[%c0_58, %c288] : memref<2x320xf32, #tpu.memory_space<vmem>>, vector<2x16xf32>
    tpu.vector_store %arg7[%c0_58, %c288], %121 {strides = array<i32>} : memref<2x320xf32, #tpu.memory_space<vmem>>, vector<2x16xf32>,
    %123 = vector.extract_strided_slice %25 {offsets = [0, 608], sizes = [2, 32], strides = [1, 1]} : vector<2x640xbf16> to vector<2x32xbf16>
    %cst_59 = arith.constant dense<0.000000e+00> : vector<2x16xf32>
    %124 = tpu.matmul %123, %26, %cst_59 {dimension_numbers = #tpu.dot_dimension_numbers<[1], [0], [0], [1], [0, 0, 1, 1], [], []>} : vector<2x32xbf16>, vector<32x16xbf16>, vector<2x16xf32> -> vector<2x16xf32>
    %125 = vector.broadcast %27 : vector<1x16xf32> to vector<2x16xf32>
    %126 = arith.addf %124, %125 : vector<2x16xf32>
    %c0_60 = arith.constant 0 : index
    %c304 = arith.constant 304 : index
    %127 = vector.load %arg7[%c0_60, %c304] : memref<2x320xf32, #tpu.memory_space<vmem>>, vector<2x16xf32>
    tpu.vector_store %arg7[%c0_60, %c304], %126 {strides = array<i32>} : memref<2x320xf32, #tpu.memory_space<vmem>>, vector<2x16xf32>,
    return
  }
}

</mosaic_0001>

<bundles_post_ra>
// kernel: coarse_to_fine_visual_cursor_decoder.1
= control target key start
LH: loop header
LB: loop body
LE: loop exit
PB: predicated region body
PF: predicated region fallthrough
CT: control target
= control target key end

     0   :  { %14 = vsyncpa [#allocation3], 0  ;;  %s1864_s27 = smov [#allocation2]   ;;  %s2296_s0 = inlined_call_operand.vmem [shape: bf16[2,32], index: 0, kind: input, shape index: {}]   ;;  %s2297_s1 = inlined_call_operand.hbm [shape: bf16[32,640], index: 1, kind: input, shape index: {}]   ;;  %s2298_s2 = inlined_call_operand.vmem [shape: f32[1,640], index: 2, kind: input, shape index: {}]   ;;  %s2299_s3 = inlined_call_operand.vmem [shape: bf16[32,16], index: 3, kind: input, shape index: {}]   ;;  %s2300_s4 = inlined_call_operand.vmem [shape: f32[1,16], index: 4, kind: input, shape index: {}]   ;;  %s2301_s5 = inlined_call_operand.vmem [shape: bf16[32,3], index: 5, kind: input, shape index: {}]   ;;  %s2302_s6 = inlined_call_operand.vmem [shape: f32[1,3], index: 6, kind: input, shape index: {}]   ;;  %s2303_s7 = inlined_call_operand.vmem [shape: f32[2,320], index: 7, kind: output, shape index: {0}]   ;;  %s2304_s8 = inlined_call_operand.vmem [shape: f32[2,3], index: 8, kind: output, shape index: {1}]  }
   0x1   :  { %s22_s28 = sshll.u32 %s1864_s27, 4  ;;  %s23_s28 = int_to_ptr.vmem [resolvable:$true] %s22_s28 }
   0x2   :  { %s1850_s29 = scalar_lea.vmem %s23_s28, 1280  ;;  %p1855_p1 = scmp.lt.s32.totalorder %s23_s28, %s23_s28 }
   0x3   :  { %p1851_p0 = scmp.ne.s32.totalorder %s23_s28, %s1850_s29  ;;  %p1856_p2 = scmp.lt.s32.totalorder %s1850_s29, %s1850_s29 }
   0x5   :  { %p1857_p3 = por %p1856_p2, %p1855_p1 }
   0x7   :  { %p1858_p4 = pnand %p1857_p3, %p1851_p0 }
   0x9   :  { %1861 = shalt.err (!%p1858_p4)
}
   0xa   :  { %s1865_s30 = smov 320   ;;  %s1866_s9 = smov 20  }
   0xb   :  { %28 = dma.hbm_to_vmem [thread:$0]  %s2297_s1, 1280, %s23_s28, [#allocation3], %s1865_s30, %s1865_s30, %s1866_s9  }
   0xc   :  { %1862 = dma.done.wait [#allocation3], 1280  }
   0xd   :  { %1863 = vsyncadd [#allocation3], 4294966016  ;;  %v1867_v0 = vmov 0.0   ;;  %vm1868_vm0 = vmmov 0   ;;  %v1869_v1 = vmov 0   ;;  %v1814_v2 = vld [vmem:[%s2301_s5 + $0x8] sm:$0xff]   ;;  %v127_v17 = vlaneseq }
   0xe   :  { %1624 = vmatprep.subr.bf16.mxu0 %v1867_v0  ;;  %1628 = vmatprep.mubr.msk.bf16.mxu0 %vm1868_vm0, %v1867_v0  ;;  %v1815_v3 = vld [vmem:[#allocation2 + $0x2c] ss:$20 sps:$4 sm:$0xff]   ;;  %v1817_v4 = vld [vmem:[#allocation2 + $0x28] ss:$20 sps:$4 sm:$0xff]   ;;  %v1819_v6 = vld [vmem:[#allocation2 + $0x4] ss:$20 sps:$4 sm:$0xff]  }
   0xf   :  { %236 = vmatprep.mubr.bf16.mxu1 %v1869_v1  ;;  %1625 = vmatpush3.bf16.msra.mxu0 %v1814_v2  ;;  %v1818_v5 = vld [vmem:[%s2301_s5] sm:$0xff]   ;;  %vm67_vm1 = vcmask 261120   ;;  %v1824_v10 = vld [vmem:[#allocation2 + $0x34] ss:$20 sps:$4 sm:$0xff]   ;;  %v1828_v12 = vld [vmem:[#allocation2 + $0x38] ss:$20 sps:$4 sm:$0xff]  }
  0x10   :  { %216 = vmatprep.subr.bf16.mxu1 %v1815_v3  ;;  %1626 = vmatprep.subr.bf16.mxu0 %v1867_v0  ;;  %v1821_v7 = vld [vmem:[#allocation2] ss:$20 sps:$4 sm:$0xff]   ;;  %v1822_v9 = vld [vmem:[#allocation2 + $0x30] ss:$20 sps:$4 sm:$0xff]   ;;  %v1825_v13 = vld [vmem:[#allocation2 + $0x8] ss:$20 sps:$4 sm:$0xff]  }
  0x11   :  { %217 = vmatpush1.bf16.msra.mxu1 %v1817_v4  ;;  %v43_v8 = vld [vmem:[%s2296_s0] sm:$0x1]  ;;  %v1829_v14 = vld [vmem:[#allocation2 + $0x10] ss:$20 sps:$4 sm:$0xff]   ;;  %v1956_v15 = vld [vmem:[%s2299_s3 + $0x8] sm:$0xff]   ;;  %v1971_v18 = vshrl.u32 %v127_v17, 7 }
  0x12   :  { %218 = vmatprep.subr.bf16.mxu1 %v1819_v6  ;;  %v1827_v11 = vld [vmem:[#allocation2 + $0xc] ss:$20 sps:$4 sm:$0xff]   ;;  %vm111_vm2 = vcmask 17408   ;;  %vm442_vm3 = vcmask 123904   ;;  %s1875_s28 = smov 48   ;;  %s1876_s29 = smov 80  }
  0x13   :  { %1627 = vmatpush3.bf16.msra.mxu0 %v1818_v5  ;;  %v1962_v16 = vld [vmem:[%s2299_s3] sm:$0xff]   ;;  %v129_v19 = vsub.s32 0, %v1971_v18  ;;  %v133_v21 = vsub.s32 1, %v1971_v18  ;;  %v137_v27 = vsub.s32 2, %v1971_v18  ;;  %v141_v31 = vsub.s32 3, %v1971_v18  ;;  %s1877_s30 = smov 112  }
  0x14   :  { %257 = vmatprep.subr.bf16.mxu0 %v1824_v10  ;;  %v125_v20 = vld [vmem:[%s2298_s2] sm:$0x1f]  ;;  %v145_v34 = vsub.s32 4, %v1971_v18  ;;  %s1870_s2 = smov 32   ;;  %vm501_vm4 = vcmask 255104   ;;  %vm559_vm5 = vcmask 386304  }
  0x15   :  { %219 = vmatpush1.bf16.msra.mxu1 %v1821_v7  ;;  %v1518_v22 = vld [vmem:[%s2302_s6] ss:$0 sm:$0xff]  ;;  %v130_v23 = vrot.slane %v125_v20, %v129_v19  ;;  %v134_v26 = vrot.slane %v125_v20, %v133_v21  ;;  %v138_v37 = vrot.slane %v125_v20, %v137_v27  ;;  %v142_v42 = vrot.slane %v125_v20, %v141_v31  ;;  %s1871_s6 = smov 96  }
  0x16   :  { %1629 = vmatmul.mubr.msk.bf16.vlgmr.msra.gmra.mxu0 %vm67_vm1, %v43_v8  ;;  %1632 = vmatprep.subr.bf16.mxu1 %v1867_v0  ;;  %v146_v45 = vrot.slane %v125_v20, %v145_v34  ;;  %vm617_vm6 = vcmask 517504   ;;  %vm673_vm7 = vcmask 648704   ;;  %vm732_vm8 = vcmask 779904  }
  0x17   :  { %258 = vmatpush1.bf16.msra.mxu0 %v1822_v9  ;;  %277 = vmatprep.mubr.bf16.mxu0 %v1869_v1  ;;  %vm790_vm9 = vcmask 911104   ;;  %vm848_vm10 = vcmask 1042304  }
  0x18   :  { %1532 = vmatmul.mubr.msk.bf16.vlgmr.msra.gmra.mxu1 %vm67_vm1, %v43_v8  ;;  %259 = vmatprep.subr.bf16.mxu0 %v1827_v11 }
  0x19   :  { %1633 = vmatpush3.bf16.msra.mxu1 %v1828_v12  ;;  %1636 = vmatprep.mubr.msk.bf16.mxu1 %vm1868_vm0, %v1867_v0 }
  0x1a   :  { %1634 = vmatprep.subr.bf16.mxu1 %v1867_v0 }
  0x1b   :  { %260 = vmatpush1.bf16.msra.mxu0 %v1825_v13 }
  0x1c   :  { %1640 = vmatprep.subr.bf16.mxu0 %v1867_v0 }
  0x1d   :  { %1635 = vmatpush3.bf16.msra.mxu1 %v1829_v14 }
  0x1e   :  { %1533 = vmatmul.mubr.msk.bf16.vlgmr.msra.gmra.mxu0 %vm67_vm1, %v43_v8  ;;  %1648 = vmatprep.subr.bf16.mxu1 %v1867_v0 }
  0x1f   :  { %1644 = vmatprep.mubr.msk.bf16.mxu0 %vm1868_vm0, %v1867_v0  ;;  %1641 = vmatpush3.bf16.msra.mxu0 %v1956_v15 }
  0x20   :  { %1637 = vmatmul.mubr.msk.bf16.vlgmr.msra.gmra.mxu1 %vm67_vm1, %v43_v8  ;;  %1642 = vmatprep.subr.bf16.mxu0 %v1867_v0 }
  0x21   :  { %1652 = vmatprep.mubr.msk.bf16.mxu1 %vm1868_vm0, %v1867_v0  ;;  %1649 = vmatpush3.bf16.msra.mxu1 %v1956_v15 }
  0x22   :  { %1650 = vmatprep.subr.bf16.mxu1 %v1867_v0 }
  0x23   :  { %1643 = vmatpush3.bf16.msra.mxu0 %v1962_v16 }
  0x24   :  { %1656 = vmatprep.subr.bf16.mxu0 %v1867_v0 }
  0x25   :  { %1651 = vmatpush3.bf16.msra.mxu1 %v1962_v16 }
  0x26   :  { %1664 = vmatprep.subr.bf16.mxu1 %v1867_v0 }
  0xd6   :  { %v105_v24 = vpop.f32.mrf.mxu0 }
  0xd7   :  { %v106_v25 = vadd.f32 %v1518_v22, %v105_v24 }
  0xd8   :  { %v238_v28 = vpop.f32.mrf.mxu1  ;;  %v1630_v29 = vpop.f32.mrf.mxu0 }
  0xd9   :  { %112 = vst.msk [vmem:[%s2304_s8] sm:$0x3] %vm111_vm2, %v106_v25  ;;  %v239_v30 = vadd.f32 %v238_v28, %v130_v23  ;;  %s1872_s8 = smov 64  }
  0xda   :  { %v240_v32 = vpop.f32.mrf.mxu1  ;;  %v108_v33 = vpop.f32.mrf.mxu0 }
  0xdb   :  { %v326_v35 = vmul.f32 %v239_v30, %v239_v30  ;;  %v241_v36 = vadd.f32 %v240_v32, %v134_v26 }
  0xdc   :  { %v242_v38 = vpop.f32.mrf.mxu1  ;;  %v1631_v39 = vpop.f32.mrf.mxu0 }
  0xdd   :  { %v331_v40 = vmul.f32 %v326_v35, %v239_v30  ;;  %v327_v41 = vmul.f32 %v241_v36, %v241_v36 }
  0xde   :  { %v243_v43 = vpop.f32.mrf.mxu1  ;;  %v279_v44 = vpop.f32.mrf.mxu0 }
  0xdf   :  { %v336_v46 = vmul.f32 0.044715, %v331_v40  ;;  %v332_v47 = vmul.f32 %v327_v41, %v241_v36  ;;  %v280_v48 = vadd.f32 %v279_v44, %v138_v37 }
  0xe0   :  { %v281_v49 = vpop.f32.mrf.mxu0  ;;  %v320_v50 = vpop.f32.mrf.mxu1 }
  0xe1   :  { %v341_v51 = vadd.f32 %v336_v46, %v239_v30  ;;  %v337_v52 = vmul.f32 0.044715, %v332_v47  ;;  %v328_v53 = vmul.f32 %v280_v48, %v280_v48  ;;  %v1987_v54 = vadd.f32 %v281_v49, %v142_v42 }
  0xe2   :  { %v283_v55 = vpop.f32.mrf.mxu0  ;;  %v1989_v56 = vadd.f32 %v320_v50, %v146_v45  ;;  %v1638_v57 = vpop.f32.mrf.mxu1 }
  0xe3   :  { %v346_v58 = vmul.f32 0.7978846, %v341_v51  ;;  %v342_v59 = vadd.f32 %v337_v52, %v241_v36  ;;  %v333_v60 = vmul.f32 %v328_v53, %v280_v48  ;;  %v329_v61 = vmul.f32 %v1987_v54, %v1987_v54 }
  0xe4   :  { %v284_v62 = vpop.f32.mrf.mxu0  ;;  %v330_v63 = vmul.f32 %v1989_v56, %v1989_v56  ;;  %v323_v1 = vpop.f32.mrf.mxu1 }
  0xe5   :  { %1832 = vtanh.f32 %v346_v58  ;;  %v347_v2 = vmul.f32 0.7978846, %v342_v59  ;;  %v338_v3 = vmul.f32 0.044715, %v333_v60  ;;  %v334_v4 = vmul.f32 %v329_v61, %v1987_v54  ;;  %v2157_v58 = vld [vmem:[%s2300_s4] ss:$0 sm:$0xff] }
  0xe6   :  { %v335_v5 = vmul.f32 %v330_v63, %v1989_v56  ;;  %v1639_v6 = vpop.f32.mrf.mxu1  ;;  %v1873_v61 = vmov 1983009808   ;;  %s1874_s4 = smov 16  }
  0xe7   :  { %1834 = vtanh.f32 %v347_v2  ;;  %v343_v7 = vadd.f32 %v338_v3, %v280_v48  ;;  %v339_v8 = vmul.f32 0.044715, %v334_v4  ;;  %v492_v62 = vunpack.c.l.s4 %v1873_v61 }
  0xe8   :  { %v340_v9 = vmul.f32 0.044715, %v335_v5 }
  0xe9   :  { %v348_v10 = vmul.f32 0.7978846, %v343_v7  ;;  %v344_v11 = vadd.f32 %v339_v8, %v1987_v54  ;;  %v493_v63 = vunpack.c.0.s8 %v492_v62 }
  0xea   :  { %v345_v13 = vadd.f32 %v340_v9, %v1989_v56 }
  0xeb   :  { %1836 = vtanh.f32 %v348_v10  ;;  %v349_v12 = vmul.f32 0.7978846, %v344_v11  ;;  %v2165_v1 = vsub.s32 %v493_v63, %v1971_v18 }
  0xec   :  { %v350_v14 = vmul.f32 0.7978846, %v345_v13 }
  0xed   :  { %1838 = vtanh.f32 %v349_v12 }
  0xee   :  { %1840 = vtanh.f32 %v350_v14 }
  0xf2   :  { %v1833_v17 = vpop.eup %1832 }
  0xf3   :  { %v356_v19 = vadd.f32 1.0, %v1833_v17 }
  0xf4   :  { %v1835_v20 = vpop.eup %1834 }
  0xf5   :  { %v361_v21 = vmul.f32 0.5, %v356_v19  ;;  %v357_v22 = vadd.f32 1.0, %v1835_v20 }
  0xf7   :  { %v366_v23 = vmul.f32 %v361_v21, %v239_v30  ;;  %v362_v24 = vmul.f32 0.5, %v357_v22 }
  0xf8   :  { %v1837_v25 = vpop.eup %1836 }
  0xf9   :  { %v371_v26 = vpack.c.bf16 %v366_v23, %v366_v23  ;;  %v367_v27 = vmul.f32 %v362_v24, %v241_v36  ;;  %v358_v28 = vadd.f32 1.0, %v1837_v25 }
  0xfa   :  { %v1839_v29 = vpop.eup %1838 }
  0xfb   :  { %561 = vrot.lane.b32.xlu1 %v371_v26, %s1870_s2  ;;  %445 = vrot.lane.b32.xlu0 %v371_v26, %s1871_s6  ;;  %v372_v31 = vpack.c.bf16 %v367_v27, %v367_v27  ;;  %v363_v32 = vmul.f32 0.5, %v358_v28  ;;  %v359_v33 = vadd.f32 1.0, %v1839_v29  ;;  %v1841_v30 = vpop.eup %1840 }
  0xfc   :  { %1645 = vmatmul.mubr.msk.bf16.vlgmr.msra.gmra.mxu0 %vm67_vm1, %v371_v26  ;;  %v360_v36 = vadd.f32 1.0, %v1841_v30 }
  0xfd   :  { %1657 = vmatpush3.bf16.msra.mxu0 %v1956_v15  ;;  %1660 = vmatprep.mubr.msk.bf16.mxu0 %vm1868_vm0, %v1867_v0  ;;  %v368_v34 = vmul.f32 %v363_v32, %v280_v48  ;;  %v364_v35 = vmul.f32 0.5, %v359_v33 }
  0xfe   :  { %1658 = vmatprep.subr.bf16.mxu0 %v1867_v0  ;;  %v365_v39 = vmul.f32 0.5, %v360_v36 }
  0xff   :  { %676 = vrot.lane.b32.xlu1 %v372_v31, %s1871_s6  ;;  %503 = vrot.lane.b32.xlu0 %v371_v26, %s1872_s8  ;;  %v373_v37 = vpack.c.bf16 %v368_v34, %v368_v34  ;;  %v369_v38 = vmul.f32 %v364_v35, %v1987_v54 }
 0x100   :  { %v370_v41 = vmul.f32 %v365_v39, %v1989_v56 }
 0x101   :  { %1659 = vmatpush3.bf16.msra.mxu0 %v1962_v16  ;;  %v2015_v40 = vpack.c.bf16 %v369_v38, %v369_v38 }
 0x102   :  { %1672 = vmatprep.subr.bf16.mxu0 %v1867_v0  ;;  %v2025_v42 = vpack.c.bf16 %v370_v41, %v370_v41 }
 0x103   :  { %792 = vrot.lane.b32.xlu1 %v372_v31, %s1870_s2  ;;  %734 = vrot.lane.b32.xlu0 %v372_v31, %s1872_s8 }
 0x107   :  { %952 = vrot.lane.b32.xlu1 %v373_v37, %s1872_s8  ;;  %895 = vrot.lane.b32.xlu0 %v373_v37, %s1871_s6 }
 0x10b   :  { %1122 = vrot.lane.b32.xlu1 %v2015_v40, %s1871_s6  ;;  %1009 = vrot.lane.b32.xlu0 %v373_v37, %s1870_s2 }
 0x10f   :  { %1236 = vrot.lane.b32.xlu1 %v2015_v40, %s1870_s2  ;;  %1179 = vrot.lane.b32.xlu0 %v2015_v40, %s1872_s8 }
 0x113   :  { %1338 = vrot.lane.b32.xlu0 %v2025_v42, %s1871_s6  ;;  %1395 = vrot.lane.b32.xlu1 %v2025_v42, %s1872_s8 }
 0x117   :  { %1452 = vrot.lane.b32.xlu0 %v2025_v42, %s1870_s2 }
 0x16d   :  { %v446_v43 = vpop.permute.xlu0 %445  ;;  %v562_v45 = vpop.permute.xlu1 %561 }
 0x16e   :  { %1653 = vmatmul.mubr.msk.bf16.vlgmr.msra.gmra.mxu1 %vm67_vm1, %v446_v43 }
 0x16f   :  { %1665 = vmatpush3.bf16.msra.mxu1 %v1956_v15  ;;  %1668 = vmatprep.mubr.msk.bf16.mxu1 %vm1868_vm0, %v1867_v0 }
 0x170   :  { %1666 = vmatprep.subr.bf16.mxu1 %v1867_v0 }
 0x171   :  { %v504_v44 = vpop.permute.xlu0 %503  ;;  %v677_v46 = vpop.permute.xlu1 %676 }
 0x172   :  { %1661 = vmatmul.mubr.msk.bf16.vlgmr.msra.gmra.mxu0 %vm67_vm1, %v504_v44 }
 0x173   :  { %1667 = vmatpush3.bf16.msra.mxu1 %v1962_v16  ;;  %1673 = vmatpush3.bf16.msra.mxu0 %v1956_v15 }
 0x174   :  { %1680 = vmatprep.subr.bf16.mxu1 %v1867_v0  ;;  %1674 = vmatprep.subr.bf16.mxu0 %v1867_v0 }
 0x175   :  { %1676 = vmatprep.mubr.msk.bf16.mxu0 %vm1868_vm0, %v1867_v0  ;;  %v735_v47 = vpop.permute.xlu0 %734  ;;  %v793_v48 = vpop.permute.xlu1 %792 }
 0x176   :  { %1669 = vmatmul.mubr.msk.bf16.vlgmr.msra.gmra.mxu1 %vm67_vm1, %v562_v45 }
 0x177   :  { %1675 = vmatpush3.bf16.msra.mxu0 %v1962_v16  ;;  %1681 = vmatpush3.bf16.msra.mxu1 %v1956_v15 }
 0x178   :  { %1682 = vmatprep.subr.bf16.mxu1 %v1867_v0  ;;  %1688 = vmatprep.subr.bf16.mxu0 %v1867_v0 }
 0x179   :  { %1684 = vmatprep.mubr.msk.bf16.mxu1 %vm1868_vm0, %v1867_v0  ;;  %v896_v49 = vpop.permute.xlu0 %895  ;;  %v953_v50 = vpop.permute.xlu1 %952 }
 0x17a   :  { %1677 = vmatmul.mubr.msk.bf16.vlgmr.msra.gmra.mxu0 %vm67_vm1, %v372_v31 }
 0x17b   :  { %1683 = vmatpush3.bf16.msra.mxu1 %v1962_v16  ;;  %1689 = vmatpush3.bf16.msra.mxu0 %v1956_v15 }
 0x17c   :  { %1690 = vmatprep.subr.bf16.mxu0 %v1867_v0  ;;  %1696 = vmatprep.subr.bf16.mxu1 %v1867_v0 }
 0x17d   :  { %1692 = vmatprep.mubr.msk.bf16.mxu0 %vm1868_vm0, %v1867_v0  ;;  %v1010_v51 = vpop.permute.xlu0 %1009  ;;  %v1123_v52 = vpop.permute.xlu1 %1122 }
 0x17e   :  { %1685 = vmatmul.mubr.msk.bf16.vlgmr.msra.gmra.mxu1 %vm67_vm1, %v677_v46 }
 0x17f   :  { %1691 = vmatpush3.bf16.msra.mxu0 %v1962_v16  ;;  %1697 = vmatpush3.bf16.msra.mxu1 %v1956_v15 }
 0x180   :  { %1698 = vmatprep.subr.bf16.mxu1 %v1867_v0  ;;  %1704 = vmatprep.subr.bf16.mxu0 %v1867_v0 }
 0x181   :  { %1700 = vmatprep.mubr.msk.bf16.mxu1 %vm1868_vm0, %v1867_v0  ;;  %v1180_v53 = vpop.permute.xlu0 %1179  ;;  %v1237_v54 = vpop.permute.xlu1 %1236 }
 0x182   :  { %1693 = vmatmul.mubr.msk.bf16.vlgmr.msra.gmra.mxu0 %vm67_vm1, %v735_v47 }
 0x183   :  { %1699 = vmatpush3.bf16.msra.mxu1 %v1962_v16  ;;  %1705 = vmatpush3.bf16.msra.mxu0 %v1956_v15 }
 0x184   :  { %1706 = vmatprep.subr.bf16.mxu0 %v1867_v0  ;;  %1712 = vmatprep.subr.bf16.mxu1 %v1867_v0 }
 0x185   :  { %1708 = vmatprep.mubr.msk.bf16.mxu0 %vm1868_vm0, %v1867_v0  ;;  %v1339_v55 = vpop.permute.xlu0 %1338  ;;  %v1396_v56 = vpop.permute.xlu1 %1395 }
 0x186   :  { %1701 = vmatmul.mubr.msk.bf16.vlgmr.msra.gmra.mxu1 %vm67_vm1, %v793_v48 }
 0x187   :  { %1707 = vmatpush3.bf16.msra.mxu0 %v1962_v16  ;;  %1713 = vmatpush3.bf16.msra.mxu1 %v1956_v15 }
 0x188   :  { %1714 = vmatprep.subr.bf16.mxu1 %v1867_v0  ;;  %1720 = vmatprep.subr.bf16.mxu0 %v1867_v0 }
 0x189   :  { %1716 = vmatprep.mubr.msk.bf16.mxu1 %vm1868_vm0, %v1867_v0  ;;  %v1453_v57 = vpop.permute.xlu0 %1452 }
 0x18a   :  { %1709 = vmatmul.mubr.msk.bf16.vlgmr.msra.gmra.mxu0 %vm67_vm1, %v373_v37 }
 0x18b   :  { %1715 = vmatpush3.bf16.msra.mxu1 %v1962_v16  ;;  %1721 = vmatpush3.bf16.msra.mxu0 %v1956_v15 }
 0x18c   :  { %1728 = vmatprep.subr.bf16.mxu1 %v1867_v0  ;;  %1722 = vmatprep.subr.bf16.mxu0 %v1867_v0 }
 0x18d   :  { %1724 = vmatprep.mubr.msk.bf16.mxu0 %vm1868_vm0, %v1867_v0 }
 0x18e   :  { %1717 = vmatmul.mubr.msk.bf16.vlgmr.msra.gmra.mxu1 %vm67_vm1, %v896_v49 }
 0x18f   :  { %1723 = vmatpush3.bf16.msra.mxu0 %v1962_v16  ;;  %1729 = vmatpush3.bf16.msra.mxu1 %v1956_v15 }
 0x190   :  { %1730 = vmatprep.subr.bf16.mxu1 %v1867_v0  ;;  %1736 = vmatprep.subr.bf16.mxu0 %v1867_v0 }
 0x191   :  { %1732 = vmatprep.mubr.msk.bf16.mxu1 %vm1868_vm0, %v1867_v0 }
 0x192   :  { %1725 = vmatmul.mubr.msk.bf16.vlgmr.msra.gmra.mxu0 %vm67_vm1, %v953_v50 }
 0x193   :  { %1731 = vmatpush3.bf16.msra.mxu1 %v1962_v16  ;;  %1737 = vmatpush3.bf16.msra.mxu0 %v1956_v15 }
 0x194   :  { %1738 = vmatprep.subr.bf16.mxu0 %v1867_v0  ;;  %1744 = vmatprep.subr.bf16.mxu1 %v1867_v0 }
 0x195   :  { %1740 = vmatprep.mubr.msk.bf16.mxu0 %vm1868_vm0, %v1867_v0 }
 0x196   :  { %1733 = vmatmul.mubr.msk.bf16.vlgmr.msra.gmra.mxu1 %vm67_vm1, %v1010_v51 }
 0x197   :  { %1739 = vmatpush3.bf16.msra.mxu0 %v1962_v16  ;;  %1745 = vmatpush3.bf16.msra.mxu1 %v1956_v15 }
 0x198   :  { %1746 = vmatprep.subr.bf16.mxu1 %v1867_v0  ;;  %1752 = vmatprep.subr.bf16.mxu0 %v1867_v0 }
 0x199   :  { %1748 = vmatprep.mubr.msk.bf16.mxu1 %vm1868_vm0, %v1867_v0 }
 0x19a   :  { %1741 = vmatmul.mubr.msk.bf16.vlgmr.msra.gmra.mxu0 %vm67_vm1, %v2015_v40 }
 0x19b   :  { %1747 = vmatpush3.bf16.msra.mxu1 %v1962_v16  ;;  %1753 = vmatpush3.bf16.msra.mxu0 %v1956_v15 }
 0x19c   :  { %1754 = vmatprep.subr.bf16.mxu0 %v1867_v0  ;;  %1760 = vmatprep.subr.bf16.mxu1 %v1867_v0 }
 0x19d   :  { %1756 = vmatprep.mubr.msk.bf16.mxu0 %vm1868_vm0, %v1867_v0 }
 0x19e   :  { %1749 = vmatmul.mubr.msk.bf16.vlgmr.msra.gmra.mxu1 %vm67_vm1, %v1123_v52 }
 0x19f   :  { %1755 = vmatpush3.bf16.msra.mxu0 %v1962_v16  ;;  %1761 = vmatpush3.bf16.msra.mxu1 %v1956_v15 }
 0x1a0   :  { %1762 = vmatprep.subr.bf16.mxu1 %v1867_v0  ;;  %1768 = vmatprep.subr.bf16.mxu0 %v1867_v0 }
 0x1a1   :  { %1764 = vmatprep.mubr.msk.bf16.mxu1 %vm1868_vm0, %v1867_v0 }
 0x1a2   :  { %1757 = vmatmul.mubr.msk.bf16.vlgmr.msra.gmra.mxu0 %vm67_vm1, %v1180_v53 }
 0x1a3   :  { %1763 = vmatpush3.bf16.msra.mxu1 %v1962_v16  ;;  %1769 = vmatpush3.bf16.msra.mxu0 %v1956_v15 }
 0x1a4   :  { %1770 = vmatprep.subr.bf16.mxu0 %v1867_v0  ;;  %1776 = vmatprep.subr.bf16.mxu1 %v1867_v0 }
 0x1a5   :  { %1772 = vmatprep.mubr.msk.bf16.mxu0 %vm1868_vm0, %v1867_v0 }
 0x1a6   :  { %1765 = vmatmul.mubr.msk.bf16.vlgmr.msra.gmra.mxu1 %vm67_vm1, %v1237_v54 }
 0x1a7   :  { %1771 = vmatpush3.bf16.msra.mxu0 %v1962_v16  ;;  %1777 = vmatpush3.bf16.msra.mxu1 %v1956_v15 }
 0x1a8   :  { %1778 = vmatprep.subr.bf16.mxu1 %v1867_v0  ;;  %1784 = vmatprep.subr.bf16.mxu0 %v1867_v0 }
 0x1a9   :  { %1780 = vmatprep.mubr.msk.bf16.mxu1 %vm1868_vm0, %v1867_v0 }
 0x1aa   :  { %1773 = vmatmul.mubr.msk.bf16.vlgmr.msra.gmra.mxu0 %vm67_vm1, %v2025_v42 }
 0x1ab   :  { %1779 = vmatpush3.bf16.msra.mxu1 %v1962_v16  ;;  %1785 = vmatpush3.bf16.msra.mxu0 %v1956_v15 }
 0x1ac   :  { %1786 = vmatprep.subr.bf16.mxu0 %v1867_v0  ;;  %1792 = vmatprep.subr.bf16.mxu1 %v1867_v0 }
 0x1ad   :  { %1788 = vmatprep.mubr.msk.bf16.mxu0 %vm1868_vm0, %v1867_v0 }
 0x1ae   :  { %1781 = vmatmul.mubr.msk.bf16.vlgmr.msra.gmra.mxu1 %vm67_vm1, %v1339_v55 }
 0x1af   :  { %1787 = vmatpush3.bf16.msra.mxu0 %v1962_v16  ;;  %1793 = vmatpush3.bf16.msra.mxu1 %v1956_v15 }
 0x1b0   :  { %1794 = vmatprep.subr.bf16.mxu1 %v1867_v0  ;;  %1796 = vmatprep.mubr.msk.bf16.mxu1 %vm1868_vm0, %v1867_v0 }
 0x1b2   :  { %1789 = vmatmul.mubr.msk.bf16.vlgmr.msra.gmra.mxu0 %vm67_vm1, %v1396_v56 }
 0x1b3   :  { %1795 = vmatpush3.bf16.msra.mxu1 %v1962_v16 }
 0x1b6   :  { %1797 = vmatmul.mubr.msk.bf16.vlgmr.msra.gmra.mxu1 %vm67_vm1, %v1453_v57 }
 0x1bc   :  { %v436_v59 = vpop.f32.mrf.mxu0 }
 0x1bd   :  { %v437_v15 = vadd.f32 %v2157_v58, %v436_v59 }
 0x1be   :  { %v1646_v60 = vpop.f32.mrf.mxu0 }
 0x1bf   :  { %443 = vst.msk [vmem:[%s2303_s7] sm:$0x3] %vm442_vm3, %v437_v15 }
 0x1c0   :  { %v439_v0 = vpop.f32.mrf.mxu0 }
 0x1c2   :  { %v1647_v16 = vpop.f32.mrf.mxu0 }
 0x22e   :  { %v484_v2 = vpop.f32.mrf.mxu1 }
 0x22f   :  { %v485_v3 = vadd.f32 %v2157_v58, %v484_v2 }
 0x230   :  { %v1654_v4 = vpop.f32.mrf.mxu1 }
 0x231   :  { %v497_v5 = vrot.slane %v485_v3, %v2165_v1 }
 0x232   :  { %v487_v6 = vpop.f32.mrf.mxu1  ;;  %v542_v7 = vpop.f32.mrf.mxu0 }
 0x233   :  { %v543_v8 = vadd.f32 %v2157_v58, %v542_v7  ;;  %498 = vrot.lane.b32.xlu1 %v497_v5, %s1874_s4 }
 0x234   :  { %v1655_v9 = vpop.f32.mrf.mxu1  ;;  %v1662_v10 = vpop.f32.mrf.mxu0 }
 0x235   :  { %v555_v11 = vrot.slane %v543_v8, %v2165_v1 }
 0x236   :  { %v545_v12 = vpop.f32.mrf.mxu0  ;;  %v600_v18 = vpop.f32.mrf.mxu1 }
 0x237   :  { %v601_v13 = vadd.f32 %v2157_v58, %v600_v18  ;;  %556 = vrot.lane.b32.xlu1 %v555_v11, %s1870_s2 }
 0x238   :  { %v1663_v14 = vpop.f32.mrf.mxu0  ;;  %v1670_v17 = vpop.f32.mrf.mxu1 }
 0x239   :  { %v613_v19 = vrot.slane %v601_v13, %v2165_v1 }
 0x23a   :  { %v603_v20 = vpop.f32.mrf.mxu1  ;;  %v656_v21 = vpop.f32.mrf.mxu0 }
 0x23b   :  { %v657_v22 = vadd.f32 %v2157_v58, %v656_v21  ;;  %614 = vrot.lane.b32.xlu1 %v613_v19, %s1875_s28 }
 0x23c   :  { %v1671_v23 = vpop.f32.mrf.mxu1  ;;  %v1678_v24 = vpop.f32.mrf.mxu0 }
 0x23d   :  { %v669_v25 = vrot.slane %v657_v22, %v2165_v1 }
 0x23e   :  { %v659_v26 = vpop.f32.mrf.mxu0  ;;  %v715_v27 = vpop.f32.mrf.mxu1 }
 0x23f   :  { %v716_v28 = vadd.f32 %v2157_v58, %v715_v27  ;;  %670 = vrot.lane.b32.xlu1 %v669_v25, %s1872_s8 }
 0x240   :  { %v1679_v29 = vpop.f32.mrf.mxu0  ;;  %v1686_v31 = vpop.f32.mrf.mxu1 }
 0x241   :  { %v728_v32 = vrot.slane %v716_v28, %v2165_v1 }
 0x242   :  { %v718_v33 = vpop.f32.mrf.mxu1  ;;  %v773_v30 = vpop.f32.mrf.mxu0 }
 0x243   :  { %v774_v34 = vadd.f32 %v2157_v58, %v773_v30  ;;  %729 = vrot.lane.b32.xlu1 %v728_v32, %s1876_s29 }
 0x244   :  { %v1687_v35 = vpop.f32.mrf.mxu1  ;;  %v1694_v36 = vpop.f32.mrf.mxu0 }
 0x245   :  { %v786_v37 = vrot.slane %v774_v34, %v2165_v1 }
 0x246   :  { %v776_v38 = vpop.f32.mrf.mxu0  ;;  %v831_v39 = vpop.f32.mrf.mxu1 }
 0x247   :  { %v832_v40 = vadd.f32 %v2157_v58, %v831_v39  ;;  %787 = vrot.lane.b32.xlu0 %v786_v37, %s1871_s6 }
 0x248   :  { %v1695_v41 = vpop.f32.mrf.mxu0  ;;  %v1702_v42 = vpop.f32.mrf.mxu1 }
 0x249   :  { %v844_v43 = vrot.slane %v832_v40, %v2165_v1 }
 0x24a   :  { %v834_v44 = vpop.f32.mrf.mxu1  ;;  %v887_v45 = vpop.f32.mrf.mxu0 }
 0x24b   :  { %v888_v46 = vadd.f32 %v2157_v58, %v887_v45  ;;  %845 = vrot.lane.b32.xlu1 %v844_v43, %s1877_s30 }
 0x24c   :  { %v1703_v47 = vpop.f32.mrf.mxu1  ;;  %v1710_v48 = vpop.f32.mrf.mxu0 }
 0x24d   :  { %893 = vst.msk [vmem:[%s2303_s7 + $0x2] sm:$0x3] %vm442_vm3, %v888_v46 }
 0x24e   :  { %v890_v49 = vpop.f32.mrf.mxu0  ;;  %v934_v50 = vpop.f32.mrf.mxu1 }
 0x24f   :  { %v935_v51 = vadd.f32 %v2157_v58, %v934_v50 }
 0x250   :  { %v1711_v52 = vpop.f32.mrf.mxu0  ;;  %v1718_v53 = vpop.f32.mrf.mxu1 }
 0x251   :  { %v947_v54 = vrot.slane %v935_v51, %v2165_v1 }
 0x252   :  { %v937_v55 = vpop.f32.mrf.mxu1  ;;  %v991_v56 = vpop.f32.mrf.mxu0 }
 0x253   :  { %v992_v57 = vadd.f32 %v2157_v58, %v991_v56  ;;  %948 = vrot.lane.b32.xlu0 %v947_v54, %s1874_s4 }
 0x254   :  { %v1719_v59 = vpop.f32.mrf.mxu1  ;;  %v1726_v15 = vpop.f32.mrf.mxu0 }
 0x255   :  { %v1004_v60 = vrot.slane %v992_v57, %v2165_v1 }
 0x256   :  { %v994_v0 = vpop.f32.mrf.mxu0  ;;  %v1048_v16 = vpop.f32.mrf.mxu1 }
 0x257   :  { %v1049_v61 = vadd.f32 %v2157_v58, %v1048_v16  ;;  %1005 = vrot.lane.b32.xlu0 %v1004_v60, %s1870_s2 }
 0x258   :  { %v1727_v62 = vpop.f32.mrf.mxu0  ;;  %v1734_v63 = vpop.f32.mrf.mxu1 }
 0x259   :  { %v1061_v2 = vrot.slane %v1049_v61, %v2165_v1 }
 0x25a   :  { %v1051_v3 = vpop.f32.mrf.mxu1  ;;  %v1103_v4 = vpop.f32.mrf.mxu0 }
 0x25b   :  { %v1104_v5 = vadd.f32 %v2157_v58, %v1103_v4  ;;  %1062 = vrot.lane.b32.xlu0 %v1061_v2, %s1875_s28 }
 0x25c   :  { %v1735_v6 = vpop.f32.mrf.mxu1  ;;  %v1742_v7 = vpop.f32.mrf.mxu0 }
 0x25d   :  { %v1116_v8 = vrot.slane %v1104_v5, %v2165_v1 }
 0x25e   :  { %v1106_v9 = vpop.f32.mrf.mxu0  ;;  %v1161_v10 = vpop.f32.mrf.mxu1 }
 0x25f   :  { %v1162_v11 = vadd.f32 %v2157_v58, %v1161_v10  ;;  %1117 = vrot.lane.b32.xlu0 %v1116_v8, %s1872_s8 }
 0x260   :  { %v1743_v12 = vpop.f32.mrf.mxu0  ;;  %v1750_v18 = vpop.f32.mrf.mxu1 }
 0x261   :  { %v1174_v13 = vrot.slane %v1162_v11, %v2165_v1 }
 0x262   :  { %v1164_v14 = vpop.f32.mrf.mxu1  ;;  %v1218_v17 = vpop.f32.mrf.mxu0 }
 0x263   :  { %v1219_v19 = vadd.f32 %v2157_v58, %v1218_v17  ;;  %1175 = vrot.lane.b32.xlu0 %v1174_v13, %s1876_s29 }
 0x264   :  { %v1751_v20 = vpop.f32.mrf.mxu1  ;;  %v1758_v21 = vpop.f32.mrf.mxu0 }
 0x265   :  { %v1231_v22 = vrot.slane %v1219_v19, %v2165_v1 }
 0x266   :  { %v1221_v23 = vpop.f32.mrf.mxu0  ;;  %v1275_v24 = vpop.f32.mrf.mxu1 }
 0x267   :  { %1232 = vrot.lane.b32.xlu1 %v1231_v22, %s1871_s6  ;;  %v1276_v43 = vadd.f32 %v2157_v58, %v1275_v24 }
 0x268   :  { %v1759_v25 = vpop.f32.mrf.mxu0  ;;  %v1766_v26 = vpop.f32.mrf.mxu1 }
 0x269   :  { %v1288_v50 = vrot.slane %v1276_v43, %v2165_v1 }
 0x26a   :  { %v1278_v27 = vpop.f32.mrf.mxu1  ;;  %v1330_v28 = vpop.f32.mrf.mxu0 }
 0x26b   :  { %v1331_v29 = vadd.f32 %v2157_v58, %v1330_v28 }
 0x26c   :  { %v1767_v31 = vpop.f32.mrf.mxu1  ;;  %v1774_v32 = vpop.f32.mrf.mxu0 }
 0x26d   :  { %1336 = vst.msk [vmem:[%s2303_s7 + $0x4] sm:$0x3] %vm442_vm3, %v1331_v29 }
 0x26e   :  { %v1333_v33 = vpop.f32.mrf.mxu0  ;;  %v1377_v30 = vpop.f32.mrf.mxu1 }
 0x26f   :  { %v1378_v34 = vadd.f32 %v2157_v58, %v1377_v30 }
 0x270   :  { %v1775_v35 = vpop.f32.mrf.mxu0  ;;  %v1782_v36 = vpop.f32.mrf.mxu1 }
 0x271   :  { %v1390_v37 = vrot.slane %v1378_v34, %v2165_v1 }
 0x272   :  { %v1380_v38 = vpop.f32.mrf.mxu1  ;;  %v1434_v39 = vpop.f32.mrf.mxu0 }
 0x273   :  { %v1435_v40 = vadd.f32 %v2157_v58, %v1434_v39  ;;  %1391 = vrot.lane.b32.xlu1 %v1390_v37, %s1874_s4 }
 0x274   :  { %v1783_v41 = vpop.f32.mrf.mxu1  ;;  %v1790_v42 = vpop.f32.mrf.mxu0 }
 0x275   :  { %v1447_v44 = vrot.slane %v1435_v40, %v2165_v1 }
 0x276   :  { %v1437_v45 = vpop.f32.mrf.mxu0  ;;  %v1491_v46 = vpop.f32.mrf.mxu1 }
 0x277   :  { %v1492_v47 = vadd.f32 %v2157_v58, %v1491_v46  ;;  %1448 = vrot.lane.b32.xlu0 %v1447_v44, %s1870_s2 }
 0x278   :  { %v1791_v48 = vpop.f32.mrf.mxu0  ;;  %v1798_v49 = vpop.f32.mrf.mxu1 }
 0x279   :  { %v1504_v51 = vrot.slane %v1492_v47, %v2165_v1 }
 0x27a   :  { %v1494_v52 = vpop.f32.mrf.mxu1 }
 0x27b   :  { %1505 = vrot.lane.b32.xlu1 %v1504_v51, %s1875_s28  ;;  %1289 = vrot.lane.b32.xlu0 %v1288_v50, %s1877_s30 }
 0x27c   :  { %v1799_v53 = vpop.f32.mrf.mxu1 }
 0x2a5   :  { %v499_v54 = vpop.permute.xlu1 %498 }
 0x2a6   :  { %502 = vst.msk [vmem:[%s2303_s7] sm:$0x3] %vm501_vm4, %v499_v54 }
 0x2a9   :  { %v557_v58 = vpop.permute.xlu1 %556 }
 0x2aa   :  { %560 = vst.msk [vmem:[%s2303_s7] sm:$0x3] %vm559_vm5, %v557_v58 }
 0x2ad   :  { %v615_v1 = vpop.permute.xlu1 %614 }
 0x2ae   :  { %618 = vst.msk [vmem:[%s2303_s7] sm:$0x3] %vm617_vm6, %v615_v1 }
 0x2b1   :  { %v671_v55 = vpop.permute.xlu1 %670 }
 0x2b2   :  { %674 = vst.msk [vmem:[%s2303_s7] sm:$0x3] %vm673_vm7, %v671_v55 }
 0x2b5   :  { %v730_v56 = vpop.permute.xlu1 %729 }
 0x2b6   :  { %733 = vst.msk [vmem:[%s2303_s7] sm:$0x3] %vm732_vm8, %v730_v56 }
 0x2b9   :  { %v788_v57 = vpop.permute.xlu0 %787 }
 0x2ba   :  { %791 = vst.msk [vmem:[%s2303_s7] sm:$0x3] %vm790_vm9, %v788_v57 }
 0x2bd   :  { %v846_v59 = vpop.permute.xlu1 %845 }
 0x2be   :  { %849 = vst.msk [vmem:[%s2303_s7] sm:$0x3] %vm848_vm10, %v846_v59 }
 0x2c5   :  { %v949_v15 = vpop.permute.xlu0 %948 }
 0x2c6   :  { %951 = vst.msk [vmem:[%s2303_s7 + $0x2] sm:$0x3] %vm501_vm4, %v949_v15 }
 0x2c9   :  { %v1006_v60 = vpop.permute.xlu0 %1005 }
 0x2ca   :  { %1008 = vst.msk [vmem:[%s2303_s7 + $0x2] sm:$0x3] %vm559_vm5, %v1006_v60 }
 0x2cd   :  { %v1063_v0 = vpop.permute.xlu0 %1062 }
 0x2ce   :  { %1065 = vst.msk [vmem:[%s2303_s7 + $0x2] sm:$0x3] %vm617_vm6, %v1063_v0 }
 0x2d1   :  { %v1118_v16 = vpop.permute.xlu0 %1117 }
 0x2d2   :  { %1120 = vst.msk [vmem:[%s2303_s7 + $0x2] sm:$0x3] %vm673_vm7, %v1118_v16 }
 0x2d5   :  { %v1176_v61 = vpop.permute.xlu0 %1175 }
 0x2d6   :  { %1178 = vst.msk [vmem:[%s2303_s7 + $0x2] sm:$0x3] %vm732_vm8, %v1176_v61 }
 0x2d9   :  { %v1233_v62 = vpop.permute.xlu1 %1232 }
 0x2da   :  { %1235 = vst.msk [vmem:[%s2303_s7 + $0x2] sm:$0x3] %vm790_vm9, %v1233_v62 }
 0x2e5   :  { %v1392_v63 = vpop.permute.xlu1 %1391 }
 0x2e6   :  { %1394 = vst.msk [vmem:[%s2303_s7 + $0x4] sm:$0x3] %vm501_vm4, %v1392_v63 }
 0x2e9   :  { %v1449_v2 = vpop.permute.xlu0 %1448 }
 0x2ea   :  { %1451 = vst.msk [vmem:[%s2303_s7 + $0x4] sm:$0x3] %vm559_vm5, %v1449_v2 }
 0x2ed   :  { %v1506_v3 = vpop.permute.xlu1 %1505  ;;  %v1290_v4 = vpop.permute.xlu0 %1289 }
 0x2ee   :  { %1508 = vst.msk [vmem:[%s2303_s7 + $0x4] sm:$0x3] %vm617_vm6, %v1506_v3 }
 0x2ef   :  { %1292 = vst.msk [vmem:[%s2303_s7 + $0x2] sm:$0x3] %vm848_vm10, %v1290_v4 }
 0x2f0   :  { %1517 = vsyncpa [#allocation3], 1 }

</bundles_post_ra>
